<compile_context>
chip_gen: v5e
topology: v5e:2x2
jax: 0.10.0
libtpu: 0.0.40
codegen_flags: <defaults>
</compile_context>

<pallas_src>
import functools

import jax
import jax.numpy as jnp
from jax.experimental import pallas as pl
from jax.experimental.pallas import tpu as pltpu

LANE = 128
SUBLANE = 8


def linear_kernel(x_ref, wt_ref, b_ref, o_ref):
    # x_ref: (TB, F)   wt_ref: (F, Cpad)   b_ref: (1, Cpad)   o_ref: (TB, Cpad)
    acc = jnp.dot(x_ref[...], wt_ref[...], preferred_element_type=jnp.float32)
    o_ref[...] = (acc + b_ref[...]).astype(o_ref.dtype)


def prepare_linear_params(weight, bias, compute_dtype=jnp.float32):
    """One-time param prep: transpose + pad classes to a lane-dense slab.

    weight: [C, F] (PyTorch nn.Linear layout), bias: [C].
    Returns wt_padded: [F, Cpad] compute_dtype, b_padded: [1, Cpad] f32.
    Pass compute_dtype=jnp.bfloat16 (with bf16 features produced upstream) on
    v5e/v6e/v7x serving paths to halve feature HBM traffic and avoid the
    multi-pass f32 MXU mode; accumulation stays f32 in the kernel.
    """
    C, F = weight.shape
    c_pad = max(LANE, pl.cdiv(C, LANE) * LANE)   # keep at exactly 128 for C=10
    wt_padded = jnp.zeros((F, c_pad), dtype=compute_dtype)
    wt_padded = wt_padded.at[:, :C].set(weight.T.astype(compute_dtype))
    b_padded = jnp.zeros((1, c_pad), dtype=jnp.float32)
    b_padded = b_padded.at[0, :C].set(bias.astype(jnp.float32))
    return wt_padded, b_padded


def _vmem_capacity_bytes():
    try:
        cap = getattr(pltpu.get_tpu_info(), "vmem_capacity_bytes", None)
        if cap:
            return int(cap)
    except Exception:
        pass
    return 64 << 20   # conservative fallback: v7x per-TensorCore VMEM


def _round8(n):
    return max(SUBLANE, ((n + SUBLANE - 1) // SUBLANE) * SUBLANE)


@functools.partial(jax.jit, static_argnames=("num_classes", "block_b"))
def linear_classifier_fwd(features, wt_padded, b_padded, *, num_classes,
                          block_b=1024):
    """features: [B, F], wt_padded: [F, Cpad], b_padded: [1, Cpad] (pre-prepped)."""
    B, F = features.shape
    c_pad = wt_padded.shape[1]

    if features.dtype != wt_padded.dtype:
        # Fallback only: bf16 weights pay off when features already arrive in
        # bf16 from the upstream producer; this cast is an extra HBM pass.
        features = features.astype(wt_padded.dtype)

    in_item = features.dtype.itemsize
    w_item = wt_padded.dtype.itemsize

    # Batch tile: multiple of 8 (sublane), capped at ceil(B/2) so the grid has
    # >= 2 steps whenever B >= 16 (v7x: both TensorCores get work).
    tb = min(_round8(block_b), _round8((B + 1) // 2))

    # Generation-aware VMEM sizing: double-buffered x and out tiles plus the
    # resident (double-buffered) weight slab and bias.  Shrink the tile until
    # it fits comfortably inside this chip's VMEM, then set an explicit limit
    # (covers v5e's 16 MiB scoped default without exceeding v7x's 64 MiB).
    def vmem_needed(t):
        return (2 * t * F * in_item          # x tiles (double-buffered)
                + 2 * F * c_pad * w_item     # weight slab (resident)
                + 2 * c_pad * 4              # bias
                + 2 * t * c_pad * 4)         # out tiles (double-buffered)

    budget = min(max(_vmem_capacity_bytes() // 2, 32 << 20), 64 << 20)
    while vmem_needed(tb) > budget and tb > SUBLANE:
        tb = _round8(tb // 2)
    vmem_limit = min(budget, max(32 << 20, int(vmem_needed(tb) * 1.25)))

    cost = pl.CostEstimate(
        flops=2 * B * F * c_pad,
        transcendentals=0,
        bytes_accessed=B * F * in_item + F * c_pad * w_item + B * c_pad * 4,
    )

    out = pl.pallas_call(
        linear_kernel,
        out_shape=jax.ShapeDtypeStruct((B, c_pad), jnp.float32),
        grid=(pl.cdiv(B, tb),),                            # ragged last block OK
        in_specs=[
            pl.BlockSpec((tb, F), lambda i: (i, 0)),       # feature tiles stream
            pl.BlockSpec((F, c_pad), lambda i: (0, 0)),    # weight stays resident
            pl.BlockSpec((1, c_pad), lambda i: (0, 0)),    # bias stays resident
        ],
        out_specs=pl.BlockSpec((tb, c_pad), lambda i: (i, 0)),
        compiler_params=pltpu.CompilerParams(
            dimension_semantics=("parallel",),
            vmem_limit_bytes=vmem_limit,
        ),
        cost_estimate=cost,
    )(features, wt_padded, b_padded)

    return out[:, :num_classes]


def linear_classifier(features, wt_padded, b_padded, *, num_classes,
                      block_b=1024, small_batch_threshold=64):
    """Dispatcher: tiny batches are pure weight-DMA latency inside the kernel,
    so use a plain XLA dot there; otherwise run the Pallas kernel."""
    if features.shape[0] < small_batch_threshold:
        logits = features.astype(wt_padded.dtype) @ wt_padded + b_padded
        return logits[:, :num_classes].astype(jnp.float32)
    return linear_classifier_fwd(features, wt_padded, b_padded,
                                 num_classes=num_classes, block_b=block_b)


if __name__ == "__main__":
    # 'resnet50' => feat_dim = 2048, num_classes = 10
    feat_dim = 2048
    num_classes = 10
    batch = 2

    key = jax.random.PRNGKey(0)
    k_x, k_w, k_b = jax.random.split(key, 3)

    features = jax.random.normal(k_x, (batch, feat_dim), dtype=jnp.float32)

    # Deterministic init mimicking nn.Linear default: U(-1/sqrt(in), 1/sqrt(in))
    bound = 1.0 / (feat_dim ** 0.5)
    weight = jax.random.uniform(k_w, (num_classes, feat_dim),
                                minval=-bound, maxval=bound, dtype=jnp.float32)
    bias = jax.random.uniform(k_b, (num_classes,),
                              minval=-bound, maxval=bound, dtype=jnp.float32)

    # One-time parameter prep (do NOT redo per forward call).
    wt_padded, b_padded = prepare_linear_params(weight, bias,
                                                compute_dtype=jnp.float32)

    # Call the Pallas path directly (the dispatcher's small-batch fast path
    # would skip the kernel at B=2); production code should use
    # linear_classifier(...) so tiny batches take the plain-dot fast path.
    out = linear_classifier_fwd(features, wt_padded, b_padded,
                                num_classes=num_classes)
    out = jax.block_until_ready(out)

    # Correctness check against plain JAX reference (f32 path, atol=1e-4).
    ref = features @ weight.T + bias
    assert out.shape == (batch, num_classes)
    assert jnp.allclose(out, ref, atol=1e-4, rtol=1e-4)

    print("KERNEL_OK")
</pallas_src>

<mosaic_0001>
module attributes {stable_mosaic.version = 11 : i64} {
  func.func @linear_kernel(%arg0: i32, %arg1: memref<8x2048xf32, #tpu.memory_space<vmem>>, %arg2: memref<2048x128xf32, #tpu.memory_space<vmem>>, %arg3: memref<1x128xf32, #tpu.memory_space<vmem>>, %arg4: memref<8x128xf32, #tpu.memory_space<vmem>>) attributes {dimension_semantics = [#tpu.dimension_semantics<parallel>], iteration_bounds = array<i64: 1>, scalar_prefetch = 0 : i64, scratch_operands = 0 : i64, tpu.core_type = #tpu.core_type<tc>, window_params = [{transform_indices = @transform_0, window_bounds = array<i64: 8, 2048>}, {pipeline_mode = #tpu.pipeline_mode<synchronous>, transform_indices = @transform_1, window_bounds = array<i64: 2048, 128>}, {pipeline_mode = #tpu.pipeline_mode<synchronous>, transform_indices = @transform_2, window_bounds = array<i64: 1, 128>}, {transform_indices = @transform_3, window_bounds = array<i64: 8, 128>}]} {
    %c0 = arith.constant 0 : index
    %c0_0 = arith.constant 0 : index
    %0 = vector.load %arg1[%c0, %c0_0] : memref<8x2048xf32, #tpu.memory_space<vmem>>, vector<8x2048xf32>
    %c0_1 = arith.constant 0 : index
    %c0_2 = arith.constant 0 : index
    %1 = vector.load %arg2[%c0_1, %c0_2] : memref<2048x128xf32, #tpu.memory_space<vmem>>, vector<2048x128xf32>
    %cst = arith.constant dense<0.000000e+00> : vector<8x128xf32>
    %2 = tpu.matmul %0, %1, %cst {dimension_numbers = #tpu.dot_dimension_numbers<[1], [0], [0], [1], [0, 0, 1, 1], [], []>} : vector<8x2048xf32>, vector<2048x128xf32>, vector<8x128xf32> -> vector<8x128xf32>
    %c0_3 = arith.constant 0 : index
    %c0_4 = arith.constant 0 : index
    %3 = vector.load %arg3[%c0_3, %c0_4] : memref<1x128xf32, #tpu.memory_space<vmem>>, vector<1x128xf32>
    %4 = vector.broadcast %3 : vector<1x128xf32> to vector<8x128xf32>
    %5 = arith.addf %2, %4 : vector<8x128xf32>
    %c0_5 = arith.constant 0 : index
    %c0_6 = arith.constant 0 : index
    %6 = vector.load %arg4[%c0_5, %c0_6] : memref<8x128xf32, #tpu.memory_space<vmem>>, vector<8x128xf32>
    tpu.vector_store %arg4[%c0_5, %c0_6], %5 {strides = array<i32>} : memref<8x128xf32, #tpu.memory_space<vmem>>, vector<8x128xf32>,
    return
  }
  func.func @transform_0(%arg0: i32) -> (i32, i32) {
    %c0_i32 = arith.constant 0 : i32
    %c0_i32_0 = arith.constant 0 : i32
    return %arg0, %c0_i32 : i32, i32
  }
  func.func @transform_1(%arg0: i32) -> (i32, i32) {
    %c0_i32 = arith.constant 0 : i32
    %c0_i32_0 = arith.constant 0 : i32
    %c0_i32_1 = arith.constant 0 : i32
    return %c0_i32, %c0_i32_0 : i32, i32
  }
  func.func @transform_2(%arg0: i32) -> (i32, i32) {
    %c0_i32 = arith.constant 0 : i32
    %c0_i32_0 = arith.constant 0 : i32
    %c0_i32_1 = arith.constant 0 : i32
    return %c0_i32, %c0_i32_0 : i32, i32
  }
  func.func @transform_3(%arg0: i32) -> (i32, i32) {
    %c0_i32 = arith.constant 0 : i32
    %c0_i32_0 = arith.constant 0 : i32
    return %arg0, %c0_i32 : i32, i32
  }
}

</mosaic_0001>

<bundles_post_ra>
// kernel: linear_classifier_fwd.1
= control target key start
LH: loop header
LB: loop body
LE: loop exit
PB: predicated region body
PF: predicated region fallthrough
CT: control target
= control target key end

     0   :  { %8 = vsyncpa [#allocation3], 0  ;;  %s865_s0 = inlined_call_operand.hbm [shape: f32[2,2048], index: 0, kind: input, shape index: {}]   ;;  %s866_s1 = inlined_call_operand.hbm [shape: f32[2048,128], index: 1, kind: input, shape index: {}]   ;;  %s867_s2 = inlined_call_operand.vmem [shape: f32[1,128], index: 2, kind: input, shape index: {}]   ;;  %s868_s3 = inlined_call_operand.hbm [shape: f32[2,128], index: 3, kind: output, shape index: {}]  }
   0x1   :  { %9 = vsyncpa [#allocation6], 0 }
   0x2   :  { %10 = vsyncpa [#allocation4], 0 }
   0x3   :  { %14 = vsyncadd [#allocation3], 1536  ;;  %s15_s14 = sshll.u32 %s865_s0, 4  ;;  %s822_s15 = smov [#allocation2]   ;;  %s16_s14 = int_to_ptr.hbm [resolvable:$true] %s15_s14 }
   0x4   :  { %s17_s16 = sshll.u32 %s822_s15, 4  ;;  %s28_s19 = sshll.u32 %s866_s1, 4  ;;  %s18_s16 = int_to_ptr.vmem [resolvable:$true] %s17_s16  ;;  %s29_s19 = int_to_ptr.hbm [resolvable:$true] %s28_s19 }
   0x5   :  { %s823_s20 = smov 512   ;;  %s824_s21 = smov 32  }
   0x6   :  { %23 = dma.hbm_to_vmem [thread:$0]  %s16_s14, 512, %s18_s16, [#allocation3], %s823_s20, %s823_s20, %s824_s21  }
   0x7   :  { %s825_s22 = smov [#allocation5]   ;;  %s826_s24 = smov 128  }
   0x8   :  { %s30_s23 = sshll.u32 %s825_s22, 4  ;;  %s827_s25 = smov 8   ;;  %s31_s23 = int_to_ptr.vmem [resolvable:$true] %s30_s23 }
   0x9   :  { %36 = dma.hbm_to_vmem [thread:$0]  %s29_s19, 32768, %s31_s23, [#allocation6], %s826_s24, %s826_s24, %s827_s25  }
   0xa   :  { %816 = dma.done.wait [#allocation3], 2048  }
   0xb   :  { %817 = vsyncadd [#allocation3], 4294965248 }
   0xc   :  { %818 = dma.done.wait [#allocation6], 32768  }
   0xd   :  { %819 = vsyncadd [#allocation6], 4294934528  ;;  %v78_v0 = vld [vmem:[#allocation5 + $0x78] sm:$0xff]  ;;  %v77_v2 = vld [vmem:[#allocation5 + $0x70] sm:$0xff] }
   0xe   :  { %v110_v1 = vld [vmem:[#allocation5 + $0x178] sm:$0xff]  ;;  %394 = vmatpush.msra.mxu0 %v78_v0  ;;  %v109_v4 = vld [vmem:[#allocation5 + $0x170] sm:$0xff]  ;;  %v76_v6 = vld [vmem:[#allocation5 + $0x68] sm:$0xff] }
   0xf   :  { %434 = vmatpush.msra.mxu2 %v110_v1  ;;  %v94_v3 = vld [vmem:[#allocation5 + $0xf8] sm:$0xff]  ;;  %v93_v7 = vld [vmem:[#allocation5 + $0xf0] sm:$0xff]  ;;  %v108_v8 = vld [vmem:[#allocation5 + $0x168] sm:$0xff] }
  0x10   :  { %v126_v5 = vld [vmem:[#allocation5 + $0x1f8] sm:$0xff]  ;;  %414 = vmatpush.msra.mxu1 %v94_v3  ;;  %395 = vmatpush.msra.mxu0 %v77_v2  ;;  %v125_v9 = vld [vmem:[#allocation5 + $0x1f0] sm:$0xff]  ;;  %v92_v10 = vld [vmem:[#allocation5 + $0xe8] sm:$0xff] }
  0x11   :  { %454 = vmatpush.msra.mxu3 %v126_v5  ;;  %435 = vmatpush.msra.mxu2 %v109_v4  ;;  %v75_v11 = vld [vmem:[#allocation5 + $0x60] sm:$0xff]  ;;  %v124_v13 = vld [vmem:[#allocation5 + $0x1e8] sm:$0xff]  ;;  %v74_v16 = vld [vmem:[#allocation5 + $0x58] sm:$0xff] }
  0x12   :  { %415 = vmatpush.msra.mxu1 %v93_v7  ;;  %v107_v12 = vld [vmem:[#allocation5 + $0x160] sm:$0xff]  ;;  %396 = vmatpush.msra.mxu0 %v76_v6  ;;  %v106_v17 = vld [vmem:[#allocation5 + $0x158] sm:$0xff]  ;;  %v73_v20 = vld [vmem:[#allocation5 + $0x50] sm:$0xff] }
  0x13   :  { %455 = vmatpush.msra.mxu3 %v125_v9  ;;  %436 = vmatpush.msra.mxu2 %v108_v8  ;;  %v91_v14 = vld [vmem:[#allocation5 + $0xe0] sm:$0xff]  ;;  %v90_v18 = vld [vmem:[#allocation5 + $0xd8] sm:$0xff]  ;;  %v105_v21 = vld [vmem:[#allocation5 + $0x150] sm:$0xff] }
  0x14   :  { %v123_v15 = vld [vmem:[#allocation5 + $0x1e0] sm:$0xff]  ;;  %416 = vmatpush.msra.mxu1 %v92_v10  ;;  %397 = vmatpush.msra.mxu0 %v75_v11  ;;  %v122_v19 = vld [vmem:[#allocation5 + $0x1d8] sm:$0xff]  ;;  %v89_v22 = vld [vmem:[#allocation5 + $0xd0] sm:$0xff] }
  0x15   :  { %456 = vmatpush.msra.mxu3 %v124_v13  ;;  %437 = vmatpush.msra.mxu2 %v107_v12  ;;  %v121_v23 = vld [vmem:[#allocation5 + $0x1d0] sm:$0xff]  ;;  %v72_v24 = vld [vmem:[#allocation5 + $0x48] sm:$0xff]  ;;  %v71_v28 = vld [vmem:[#allocation5 + $0x40] sm:$0xff] }
  0x16   :  { %417 = vmatpush.msra.mxu1 %v91_v14  ;;  %398 = vmatpush.msra.mxu0 %v74_v16  ;;  %v104_v25 = vld [vmem:[#allocation5 + $0x148] sm:$0xff]  ;;  %v103_v29 = vld [vmem:[#allocation5 + $0x140] sm:$0xff]  ;;  %v70_v32 = vld [vmem:[#allocation5 + $0x38] sm:$0xff] }
  0x17   :  { %457 = vmatpush.msra.mxu3 %v123_v15  ;;  %438 = vmatpush.msra.mxu2 %v106_v17  ;;  %v88_v26 = vld [vmem:[#allocation5 + $0xc8] sm:$0xff]  ;;  %v87_v30 = vld [vmem:[#allocation5 + $0xc0] sm:$0xff]  ;;  %v102_v33 = vld [vmem:[#allocation5 + $0x138] sm:$0xff] }
  0x18   :  { %418 = vmatpush.msra.mxu1 %v90_v18  ;;  %399 = vmatpush.msra.mxu0 %v73_v20  ;;  %v120_v27 = vld [vmem:[#allocation5 + $0x1c8] sm:$0xff]  ;;  %v119_v31 = vld [vmem:[#allocation5 + $0x1c0] sm:$0xff]  ;;  %v86_v34 = vld [vmem:[#allocation5 + $0xb8] sm:$0xff] }
  0x19   :  { %458 = vmatpush.msra.mxu3 %v122_v19  ;;  %439 = vmatpush.msra.mxu2 %v105_v21  ;;  %v118_v35 = vld [vmem:[#allocation5 + $0x1b8] sm:$0xff]  ;;  %v69_v36 = vld [vmem:[#allocation5 + $0x30] sm:$0xff]  ;;  %v68_v40 = vld [vmem:[#allocation5 + $0x28] sm:$0xff] }
  0x1a   :  { %419 = vmatpush.msra.mxu1 %v89_v22  ;;  %400 = vmatpush.msra.mxu0 %v72_v24  ;;  %v101_v37 = vld [vmem:[#allocation5 + $0x130] sm:$0xff]  ;;  %v100_v41 = vld [vmem:[#allocation5 + $0x128] sm:$0xff]  ;;  %v67_v44 = vld [vmem:[#allocation5 + $0x20] sm:$0xff] }
  0x1b   :  { %459 = vmatpush.msra.mxu3 %v121_v23  ;;  %440 = vmatpush.msra.mxu2 %v104_v25  ;;  %v85_v38 = vld [vmem:[#allocation5 + $0xb0] sm:$0xff]  ;;  %v84_v42 = vld [vmem:[#allocation5 + $0xa8] sm:$0xff]  ;;  %v99_v45 = vld [vmem:[#allocation5 + $0x120] sm:$0xff] }
  0x1c   :  { %420 = vmatpush.msra.mxu1 %v88_v26  ;;  %401 = vmatpush.msra.mxu0 %v71_v28  ;;  %v117_v39 = vld [vmem:[#allocation5 + $0x1b0] sm:$0xff]  ;;  %v116_v43 = vld [vmem:[#allocation5 + $0x1a8] sm:$0xff]  ;;  %v83_v46 = vld [vmem:[#allocation5 + $0xa0] sm:$0xff] }
  0x1d   :  { %460 = vmatpush.msra.mxu3 %v120_v27  ;;  %441 = vmatpush.msra.mxu2 %v103_v29  ;;  %v115_v47 = vld [vmem:[#allocation5 + $0x1a0] sm:$0xff]  ;;  %v66_v48 = vld [vmem:[#allocation5 + $0x18] sm:$0xff]  ;;  %v65_v52 = vld [vmem:[#allocation5 + $0x10] sm:$0xff] }
  0x1e   :  { %421 = vmatpush.msra.mxu1 %v87_v30  ;;  %402 = vmatpush.msra.mxu0 %v70_v32  ;;  %v98_v49 = vld [vmem:[#allocation5 + $0x118] sm:$0xff]  ;;  %v97_v53 = vld [vmem:[#allocation5 + $0x110] sm:$0xff]  ;;  %v64_v56 = vld [vmem:[#allocation5 + $0x8] sm:$0xff] }
  0x1f   :  { %461 = vmatpush.msra.mxu3 %v119_v31  ;;  %442 = vmatpush.msra.mxu2 %v102_v33  ;;  %v82_v50 = vld [vmem:[#allocation5 + $0x98] sm:$0xff]  ;;  %v81_v54 = vld [vmem:[#allocation5 + $0x90] sm:$0xff]  ;;  %v96_v57 = vld [vmem:[#allocation5 + $0x108] sm:$0xff] }
  0x20   :  { %422 = vmatpush.msra.mxu1 %v86_v34  ;;  %403 = vmatpush.msra.mxu0 %v69_v36  ;;  %v114_v51 = vld [vmem:[#allocation5 + $0x198] sm:$0xff]  ;;  %v113_v55 = vld [vmem:[#allocation5 + $0x190] sm:$0xff]  ;;  %v80_v58 = vld [vmem:[#allocation5 + $0x88] sm:$0xff] }
  0x21   :  { %462 = vmatpush.msra.mxu3 %v118_v35  ;;  %443 = vmatpush.msra.mxu2 %v101_v37  ;;  %v112_v59 = vld [vmem:[#allocation5 + $0x188] sm:$0xff]  ;;  %v63_v60 = vld [vmem:[#allocation5] sm:$0xff]  ;;  %v142_v62 = vld [vmem:[#allocation5 + $0x278] sm:$0xff] }
  0x22   :  { %423 = vmatpush.msra.mxu1 %v85_v38  ;;  %404 = vmatpush.msra.mxu0 %v68_v40  ;;  %v95_v61 = vld [vmem:[#allocation5 + $0x100] sm:$0xff]  ;;  %v174_v63 = vld [vmem:[#allocation5 + $0x378] sm:$0xff]  ;;  %v141_v2 = vld [vmem:[#allocation5 + $0x270] sm:$0xff] }
  0x23   :  { %463 = vmatpush.msra.mxu3 %v117_v39  ;;  %444 = vmatpush.msra.mxu2 %v100_v41  ;;  %v79_v0 = vld [vmem:[#allocation5 + $0x80] sm:$0xff]  ;;  %v158_v3 = vld [vmem:[#allocation5 + $0x2f8] sm:$0xff]  ;;  %v173_v4 = vld [vmem:[#allocation5 + $0x370] sm:$0xff] }
  0x24   :  { %424 = vmatpush.msra.mxu1 %v84_v42  ;;  %405 = vmatpush.msra.mxu0 %v67_v44  ;;  %v111_v1 = vld [vmem:[#allocation5 + $0x180] sm:$0xff]  ;;  %v190_v5 = vld [vmem:[#allocation5 + $0x3f8] sm:$0xff]  ;;  %v140_v6 = vld [vmem:[#allocation5 + $0x268] sm:$0xff] }
  0x25   :  { %464 = vmatpush.msra.mxu3 %v116_v43  ;;  %445 = vmatpush.msra.mxu2 %v99_v45  ;;  %v157_v7 = vld [vmem:[#allocation5 + $0x2f0] sm:$0xff]  ;;  %v172_v8 = vld [vmem:[#allocation5 + $0x368] sm:$0xff]  ;;  %v139_v10 = vld [vmem:[#allocation5 + $0x260] sm:$0xff] }
  0x26   :  { %425 = vmatpush.msra.mxu1 %v83_v46  ;;  %406 = vmatpush.msra.mxu0 %v66_v48  ;;  %v189_v9 = vld [vmem:[#allocation5 + $0x3f0] sm:$0xff]  ;;  %v156_v11 = vld [vmem:[#allocation5 + $0x2e8] sm:$0xff]  ;;  %v171_v12 = vld [vmem:[#allocation5 + $0x360] sm:$0xff] }
  0x27   :  { %465 = vmatpush.msra.mxu3 %v115_v47  ;;  %446 = vmatpush.msra.mxu2 %v98_v49  ;;  %v188_v13 = vld [vmem:[#allocation5 + $0x3e8] sm:$0xff]  ;;  %v138_v14 = vld [vmem:[#allocation5 + $0x258] sm:$0xff]  ;;  %v155_v15 = vld [vmem:[#allocation5 + $0x2e0] sm:$0xff] }
  0x28   :  { %426 = vmatpush.msra.mxu1 %v82_v50  ;;  %407 = vmatpush.msra.mxu0 %v65_v52  ;;  %v170_v16 = vld [vmem:[#allocation5 + $0x358] sm:$0xff]  ;;  %v187_v17 = vld [vmem:[#allocation5 + $0x3e0] sm:$0xff]  ;;  %v137_v18 = vld [vmem:[#allocation5 + $0x250] sm:$0xff] }
  0x29   :  { %466 = vmatpush.msra.mxu3 %v114_v51  ;;  %447 = vmatpush.msra.mxu2 %v97_v53  ;;  %v154_v19 = vld [vmem:[#allocation5 + $0x2d8] sm:$0xff]  ;;  %v169_v20 = vld [vmem:[#allocation5 + $0x350] sm:$0xff]  ;;  %v136_v22 = vld [vmem:[#allocation5 + $0x248] sm:$0xff] }
  0x2a   :  { %427 = vmatpush.msra.mxu1 %v81_v54  ;;  %408 = vmatpush.msra.mxu0 %v64_v56  ;;  %v186_v21 = vld [vmem:[#allocation5 + $0x3d8] sm:$0xff]  ;;  %v153_v23 = vld [vmem:[#allocation5 + $0x2d0] sm:$0xff]  ;;  %v168_v24 = vld [vmem:[#allocation5 + $0x348] sm:$0xff] }
  0x2b   :  { %467 = vmatpush.msra.mxu3 %v113_v55  ;;  %448 = vmatpush.msra.mxu2 %v96_v57  ;;  %v185_v25 = vld [vmem:[#allocation5 + $0x3d0] sm:$0xff]  ;;  %v47_v26 = vld [vmem:[#allocation2] sm:$0xff]  ;;  %v152_v30 = vld [vmem:[#allocation5 + $0x2c8] sm:$0xff] }
  0x2c   :  { %428 = vmatpush.msra.mxu1 %v80_v58  ;;  %409 = vmatpush.msra.mxu0 %v63_v60  ;;  %v51_v27 = vld [vmem:[#allocation2 + $0x20] sm:$0xff]  ;;  %339 = vst [vmem:[#allocation1] ss:$4 sm:$0xff] %v47_v26  ;;  %v184_v33 = vld [vmem:[#allocation5 + $0x3c8] sm:$0xff]  ;;  %v134_v34 = vld [vmem:[#allocation5 + $0x238] sm:$0xff] }
  0x2d   :  { %468 = vmatpush.msra.mxu3 %v112_v59  ;;  %449 = vmatpush.msra.mxu2 %v95_v61  ;;  %v55_v28 = vld [vmem:[#allocation2 + $0x40] sm:$0xff]  ;;  %341 = vst [vmem:[#allocation1 + $0x1] ss:$4 sm:$0xff] %v51_v27  ;;  %v166_v36 = vld [vmem:[#allocation5 + $0x338] sm:$0xff]  ;;  %v133_v38 = vld [vmem:[#allocation5 + $0x230] sm:$0xff] }
  0x2e   :  { %474 = vmatpush.msrb.mxu0 %v142_v62  ;;  %429 = vmatpush.msra.mxu1 %v79_v0  ;;  %v135_v29 = vld [vmem:[#allocation5 + $0x240] sm:$0xff]  ;;  %343 = vst [vmem:[#allocation1 + $0x2] ss:$4 sm:$0xff] %v55_v28  ;;  %v150_v39 = vld [vmem:[#allocation5 + $0x2b8] sm:$0xff]  ;;  %v165_v40 = vld [vmem:[#allocation5 + $0x330] sm:$0xff] }
  0x2f   :  { %514 = vmatpush.msrb.mxu2 %v174_v63  ;;  %469 = vmatpush.msra.mxu3 %v111_v1  ;;  %v59_v31 = vld [vmem:[#allocation2 + $0x60] sm:$0xff]  ;;  %v182_v41 = vld [vmem:[#allocation5 + $0x3b8] sm:$0xff]  ;;  %v132_v42 = vld [vmem:[#allocation5 + $0x228] sm:$0xff] }
  0x30   :  { %475 = vmatpush.msrb.mxu0 %v141_v2  ;;  %494 = vmatpush.msrb.mxu1 %v158_v3  ;;  %v167_v32 = vld [vmem:[#allocation5 + $0x340] sm:$0xff]  ;;  %345 = vst [vmem:[#allocation1 + $0x3] ss:$4 sm:$0xff] %v59_v31  ;;  %v149_v43 = vld [vmem:[#allocation5 + $0x2b0] sm:$0xff]  ;;  %v164_v44 = vld [vmem:[#allocation5 + $0x328] sm:$0xff] }
  0x31   :  { %515 = vmatpush.msrb.mxu2 %v173_v4  ;;  %534 = vmatpush.msrb.mxu3 %v190_v5  ;;  %v151_v35 = vld [vmem:[#allocation5 + $0x2c0] sm:$0xff]  ;;  %v181_v45 = vld [vmem:[#allocation5 + $0x3b0] sm:$0xff]  ;;  %v148_v47 = vld [vmem:[#allocation5 + $0x2a8] sm:$0xff] }
  0x32   :  { %476 = vmatpush.msrb.mxu0 %v140_v6  ;;  %495 = vmatpush.msrb.mxu1 %v157_v7  ;;  %v183_v37 = vld [vmem:[#allocation5 + $0x3c0] sm:$0xff]  ;;  %v48_v49 = vld [vmem:[#allocation2 + $0x8] sm:$0xff]  ;;  %v130_v52 = vld [vmem:[#allocation5 + $0x218] sm:$0xff] }
  0x33   :  { %516 = vmatpush.msrb.mxu2 %v172_v8  ;;  %535 = vmatpush.msrb.mxu3 %v189_v9  ;;  %v131_v46 = vld [vmem:[#allocation5 + $0x220] sm:$0xff]  ;;  %v52_v50 = vld [vmem:[#allocation2 + $0x28] sm:$0xff]  ;;  %347 = vst [vmem:[#allocation1 + $0x20] ss:$4 sm:$0xff] %v48_v49  ;;  %v162_v54 = vld [vmem:[#allocation5 + $0x318] sm:$0xff] }
  0x34   :  { %477 = vmatpush.msrb.mxu0 %v139_v10  ;;  %496 = vmatpush.msrb.mxu1 %v156_v11  ;;  %v163_v48 = vld [vmem:[#allocation5 + $0x320] sm:$0xff]  ;;  %v180_v51 = vld [vmem:[#allocation5 + $0x3a8] sm:$0xff]  ;;  %v49_v56 = vld [vmem:[#allocation2 + $0x10] sm:$0xff]  ;;  %349 = vst [vmem:[#allocation1 + $0x21] ss:$4 sm:$0xff] %v52_v50 }
  0x35   :  { %517 = vmatpush.msrb.mxu2 %v171_v12  ;;  %536 = vmatpush.msrb.mxu3 %v188_v13  ;;  %v147_v53 = vld [vmem:[#allocation5 + $0x2a0] sm:$0xff]  ;;  %v53_v57 = vld [vmem:[#allocation2 + $0x30] sm:$0xff]  ;;  %v146_v0 = vld [vmem:[#allocation5 + $0x298] sm:$0xff] }
  0x36   :  { %478 = vmatpush.msrb.mxu0 %v138_v14  ;;  %497 = vmatpush.msrb.mxu1 %v155_v15  ;;  %v179_v55 = vld [vmem:[#allocation5 + $0x3a0] sm:$0xff]  ;;  %v57_v58 = vld [vmem:[#allocation2 + $0x50] sm:$0xff]  ;;  %v178_v3 = vld [vmem:[#allocation5 + $0x398] sm:$0xff] }
  0x37   :  { %518 = vmatpush.msrb.mxu2 %v170_v16  ;;  %537 = vmatpush.msrb.mxu3 %v187_v17  ;;  %v354_v59 = vld.sshfl [vmem:[#allocation1] sm:$0xff pattern:$0x73625140]  ;;  %v356_v60 = vld.sshfl [vmem:[#allocation1 + $0x10] sm:$0xff pattern:$0x73625140] }
  0x38   :  { %479 = vmatpush.msrb.mxu0 %v137_v18  ;;  %498 = vmatpush.msrb.mxu1 %v154_v19  ;;  %v355_v61 = vld.sshfl [vmem:[#allocation1 + $0x8] sm:$0xff pattern:$0x73625140]  ;;  %v357_v62 = vld.sshfl [vmem:[#allocation1 + $0x18] sm:$0xff pattern:$0x73625140] }
  0x39   :  { %519 = vmatpush.msrb.mxu2 %v169_v20  ;;  %538 = vmatpush.msrb.mxu3 %v186_v21  ;;  %v129_v63 = vld [vmem:[#allocation5 + $0x210] sm:$0xff]  ;;  %362 = vst [vmem:[#allocation1] ss:$4 sm:$0xff] %v49_v56  ;;  %v56_v4 = vld [vmem:[#allocation2 + $0x48] sm:$0xff]  ;;  %v127_v10 = vld [vmem:[#allocation5 + $0x200] sm:$0xff] }
  0x3a   :  { %480 = vmatpush.msrb.mxu0 %v136_v22  ;;  %499 = vmatpush.msrb.mxu1 %v153_v23  ;;  %v61_v1 = vld [vmem:[#allocation2 + $0x70] sm:$0xff]  ;;  %363 = vst [vmem:[#allocation1 + $0x1] ss:$4 sm:$0xff] %v53_v57  ;;  %v128_v5 = vld [vmem:[#allocation5 + $0x208] sm:$0xff]  ;;  %v159_v12 = vld [vmem:[#allocation5 + $0x300] sm:$0xff] }
  0x3b   :  { %520 = vmatpush.msrb.mxu2 %v168_v24  ;;  %539 = vmatpush.msrb.mxu3 %v185_v25  ;;  %v161_v2 = vld [vmem:[#allocation5 + $0x310] sm:$0xff]  ;;  %364 = vst [vmem:[#allocation1 + $0x2] ss:$4 sm:$0xff] %v57_v58  ;;  %v60_v7 = vld [vmem:[#allocation2 + $0x68] sm:$0xff]  ;;  %v206_v14 = vld [vmem:[#allocation5 + $0x478] sm:$0xff] }
  0x3c   :  { %481 = vmatpush.msrb.mxu0 %v135_v29  ;;  %500 = vmatpush.msrb.mxu1 %v152_v30  ;;  %v145_v6 = vld [vmem:[#allocation5 + $0x290] sm:$0xff]  ;;  %v160_v8 = vld [vmem:[#allocation5 + $0x308] sm:$0xff]  ;;  %365 = vst [vmem:[#allocation1 + $0x3] ss:$4 sm:$0xff] %v61_v1  ;;  %v238_v15 = vld [vmem:[#allocation5 + $0x578] sm:$0xff] }
  0x3d   :  { %521 = vmatpush.msrb.mxu2 %v167_v32  ;;  %540 = vmatpush.msrb.mxu3 %v184_v33  ;;  %v177_v9 = vld [vmem:[#allocation5 + $0x390] sm:$0xff]  ;;  %v144_v11 = vld [vmem:[#allocation5 + $0x288] sm:$0xff]  ;;  %351 = vst [vmem:[#allocation1 + $0x22] ss:$4 sm:$0xff] %v56_v4  ;;  %v143_v16 = vld [vmem:[#allocation5 + $0x280] sm:$0xff] }
  0x3e   :  { %482 = vmatpush.msrb.mxu0 %v134_v34  ;;  %501 = vmatpush.msrb.mxu1 %v151_v35  ;;  %v176_v13 = vld [vmem:[#allocation5 + $0x388] sm:$0xff]  ;;  %353 = vst [vmem:[#allocation1 + $0x23] ss:$4 sm:$0xff] %v60_v7  ;;  %v175_v17 = vld [vmem:[#allocation5 + $0x380] sm:$0xff]  ;;  %v205_v18 = vld [vmem:[#allocation5 + $0x470] sm:$0xff] }
  0x3f   :  { %522 = vmatpush.msrb.mxu2 %v166_v36  ;;  %541 = vmatpush.msrb.mxu3 %v183_v37  ;;  %v222_v19 = vld [vmem:[#allocation5 + $0x4f8] sm:$0xff]  ;;  %v237_v20 = vld [vmem:[#allocation5 + $0x570] sm:$0xff]  ;;  %v204_v22 = vld [vmem:[#allocation5 + $0x468] sm:$0xff] }
  0x40   :  { %483 = vmatpush.msrb.mxu0 %v133_v38  ;;  %502 = vmatpush.msrb.mxu1 %v150_v39  ;;  %v254_v21 = vld [vmem:[#allocation5 + $0x5f8] sm:$0xff]  ;;  %v221_v23 = vld [vmem:[#allocation5 + $0x4f0] sm:$0xff]  ;;  %v236_v24 = vld [vmem:[#allocation5 + $0x568] sm:$0xff] }
  0x41   :  { %523 = vmatpush.msrb.mxu2 %v165_v40  ;;  %542 = vmatpush.msrb.mxu3 %v182_v41  ;;  %v253_v25 = vld [vmem:[#allocation5 + $0x5f0] sm:$0xff]  ;;  %v50_v26 = vld [vmem:[#allocation2 + $0x18] sm:$0xff]  ;;  %v203_v33 = vld [vmem:[#allocation5 + $0x460] sm:$0xff] }
  0x42   :  { %484 = vmatpush.msrb.mxu0 %v132_v42  ;;  %503 = vmatpush.msrb.mxu1 %v149_v43  ;;  %v54_v27 = vld [vmem:[#allocation2 + $0x38] sm:$0xff]  ;;  %v220_v34 = vld [vmem:[#allocation5 + $0x4e8] sm:$0xff]  ;;  %v235_v36 = vld [vmem:[#allocation5 + $0x560] sm:$0xff] }
  0x43   :  { %524 = vmatpush.msrb.mxu2 %v164_v44  ;;  %543 = vmatpush.msrb.mxu3 %v181_v45  ;;  %v58_v28 = vld [vmem:[#allocation2 + $0x58] sm:$0xff]  ;;  %v252_v37 = vld [vmem:[#allocation5 + $0x5e8] sm:$0xff]  ;;  %v219_v39 = vld [vmem:[#allocation5 + $0x4e0] sm:$0xff] }
  0x44   :  { %485 = vmatpush.msrb.mxu0 %v131_v46  ;;  %504 = vmatpush.msrb.mxu1 %v148_v47  ;;  %v62_v35 = vld [vmem:[#allocation2 + $0x78] sm:$0xff]  ;;  %v251_v41 = vld [vmem:[#allocation5 + $0x5e0] sm:$0xff]  ;;  %v201_v42 = vld [vmem:[#allocation5 + $0x450] sm:$0xff] }
  0x45   :  { %525 = vmatpush.msrb.mxu2 %v163_v48  ;;  %544 = vmatpush.msrb.mxu3 %v180_v51  ;;  %v360_v29 = vld.sshfl [vmem:[#allocation1 + $0x30] sm:$0xff pattern:$0x73625140]  ;;  %v358_v30 = vld.sshfl [vmem:[#allocation1 + $0x20] sm:$0xff pattern:$0x73625140] }
  0x46   :  { %486 = vmatpush.msrb.mxu0 %v130_v52  ;;  %505 = vmatpush.msrb.mxu1 %v147_v53  ;;  %v361_v31 = vld.sshfl [vmem:[#allocation1 + $0x38] sm:$0xff pattern:$0x73625140]  ;;  %v359_v32 = vld.sshfl [vmem:[#allocation1 + $0x28] sm:$0xff pattern:$0x73625140] }
  0x47   :  { %526 = vmatpush.msrb.mxu2 %v162_v54  ;;  %545 = vmatpush.msrb.mxu3 %v179_v55  ;;  %366 = vst [vmem:[#allocation1 + $0x20] ss:$4 sm:$0xff] %v50_v26  ;;  %v202_v38 = vld [vmem:[#allocation5 + $0x458] sm:$0xff]  ;;  %v233_v44 = vld [vmem:[#allocation5 + $0x550] sm:$0xff]  ;;  %v200_v46 = vld [vmem:[#allocation5 + $0x448] sm:$0xff] }
  0x48   :  { %487 = vmatpush.msrb.mxu0 %v129_v63  ;;  %506 = vmatpush.msrb.mxu1 %v146_v0  ;;  %367 = vst [vmem:[#allocation1 + $0x21] ss:$4 sm:$0xff] %v54_v27  ;;  %v234_v40 = vld [vmem:[#allocation5 + $0x558] sm:$0xff]  ;;  %v217_v47 = vld [vmem:[#allocation5 + $0x4d0] sm:$0xff]  ;;  %v232_v48 = vld [vmem:[#allocation5 + $0x548] sm:$0xff] }
  0x49   :  { %527 = vmatpush.msrb.mxu2 %v161_v2  ;;  %546 = vmatpush.msrb.mxu3 %v178_v3  ;;  %368 = vst [vmem:[#allocation1 + $0x22] ss:$4 sm:$0xff] %v58_v28  ;;  %v218_v43 = vld [vmem:[#allocation5 + $0x4d8] sm:$0xff]  ;;  %v249_v49 = vld [vmem:[#allocation5 + $0x5d0] sm:$0xff]  ;;  %v199_v50 = vld [vmem:[#allocation5 + $0x440] sm:$0xff] }
  0x4a   :  { %488 = vmatpush.msrb.mxu0 %v128_v5  ;;  %507 = vmatpush.msrb.mxu1 %v145_v6  ;;  %369 = vst [vmem:[#allocation1 + $0x23] ss:$4 sm:$0xff] %v62_v35  ;;  %v250_v45 = vld [vmem:[#allocation5 + $0x5d8] sm:$0xff]  ;;  %v216_v51 = vld [vmem:[#allocation5 + $0x4c8] sm:$0xff]  ;;  %v231_v52 = vld [vmem:[#allocation5 + $0x540] sm:$0xff] }
  0x4b   :  { %528 = vmatpush.msrb.mxu2 %v160_v8  ;;  %547 = vmatpush.msrb.mxu3 %v177_v9  ;;  %v248_v53 = vld [vmem:[#allocation5 + $0x5c8] sm:$0xff]  ;;  %v198_v54 = vld [vmem:[#allocation5 + $0x438] sm:$0xff]  ;;  %v215_v55 = vld [vmem:[#allocation5 + $0x4c0] sm:$0xff] }
  0x4c   :  { %489 = vmatpush.msrb.mxu0 %v127_v10  ;;  %508 = vmatpush.msrb.mxu1 %v144_v11  ;;  %v230_v56 = vld [vmem:[#allocation5 + $0x538] sm:$0xff]  ;;  %v247_v57 = vld [vmem:[#allocation5 + $0x5c0] sm:$0xff]  ;;  %v197_v58 = vld [vmem:[#allocation5 + $0x430] sm:$0xff] }
  0x4d   :  { %529 = vmatpush.msrb.mxu2 %v159_v12  ;;  %548 = vmatpush.msrb.mxu3 %v176_v13  ;;  %v213_v63 = vld [vmem:[#allocation5 + $0x4b0] sm:$0xff]  ;;  %v228_v0 = vld [vmem:[#allocation5 + $0x528] sm:$0xff]  ;;  %v195_v2 = vld [vmem:[#allocation5 + $0x420] sm:$0xff] }
  0x4e   :  { %410 = vmatmul.f32.vlgmr.msra.gmra.mxu0 %v354_v59  ;;  %450 = vmatmul.f32.vlgmr.msra.gmra.mxu2 %v356_v60  ;;  %v214_v59 = vld [vmem:[#allocation5 + $0x4b8] sm:$0xff]  ;;  %v229_v60 = vld [vmem:[#allocation5 + $0x530] sm:$0xff]  ;;  %v212_v3 = vld [vmem:[#allocation5 + $0x4a8] sm:$0xff] }
  0x4f   :  { %554 = vmatpush.msra.mxu0 %v206_v14  ;;  %594 = vmatpush.msra.mxu2 %v238_v15  ;;  %v245_v1 = vld [vmem:[#allocation5 + $0x5b0] sm:$0xff]  ;;  %v227_v4 = vld [vmem:[#allocation5 + $0x520] sm:$0xff]  ;;  %v244_v5 = vld [vmem:[#allocation5 + $0x5a8] sm:$0xff] }
  0x50   :  { %509 = vmatpush.msrb.mxu1 %v143_v16  ;;  %549 = vmatpush.msrb.mxu3 %v175_v17  ;;  %v194_v6 = vld [vmem:[#allocation5 + $0x418] sm:$0xff]  ;;  %v211_v7 = vld [vmem:[#allocation5 + $0x4a0] sm:$0xff]  ;;  %v193_v10 = vld [vmem:[#allocation5 + $0x410] sm:$0xff] }
  0x51   :  { %430 = vmatmul.f32.vlgmr.msra.gmra.mxu1 %v355_v61  ;;  %470 = vmatmul.f32.vlgmr.msra.gmra.mxu3 %v357_v62  ;;  %v246_v61 = vld [vmem:[#allocation5 + $0x5b8] sm:$0xff]  ;;  %v196_v62 = vld [vmem:[#allocation5 + $0x428] sm:$0xff]  ;;  %v243_v9 = vld [vmem:[#allocation5 + $0x5a0] sm:$0xff] }
  0x52   :  { %555 = vmatpush.msra.mxu0 %v205_v18  ;;  %574 = vmatpush.msra.mxu1 %v222_v19  ;;  %v226_v8 = vld [vmem:[#allocation5 + $0x518] sm:$0xff]  ;;  %v225_v12 = vld [vmem:[#allocation5 + $0x510] sm:$0xff]  ;;  %v192_v14 = vld [vmem:[#allocation5 + $0x408] sm:$0xff] }
  0x53   :  { %595 = vmatpush.msra.mxu2 %v237_v20  ;;  %614 = vmatpush.msra.mxu3 %v254_v21  ;;  %v210_v11 = vld [vmem:[#allocation5 + $0x498] sm:$0xff]  ;;  %v209_v15 = vld [vmem:[#allocation5 + $0x490] sm:$0xff]  ;;  %v224_v16 = vld [vmem:[#allocation5 + $0x508] sm:$0xff] }
  0x54   :  { %556 = vmatpush.msra.mxu0 %v204_v22  ;;  %575 = vmatpush.msra.mxu1 %v221_v23  ;;  %v242_v13 = vld [vmem:[#allocation5 + $0x598] sm:$0xff]  ;;  %v241_v17 = vld [vmem:[#allocation5 + $0x590] sm:$0xff]  ;;  %v191_v18 = vld [vmem:[#allocation5 + $0x400] sm:$0xff] }
  0x55   :  { %596 = vmatpush.msra.mxu2 %v236_v24  ;;  %615 = vmatpush.msra.mxu3 %v253_v25  ;;  %v208_v19 = vld [vmem:[#allocation5 + $0x488] sm:$0xff]  ;;  %v223_v20 = vld [vmem:[#allocation5 + $0x500] sm:$0xff]  ;;  %v370_v22 = vld.sshfl [vmem:[#allocation1] sm:$0xff pattern:$0x73625140] }
  0x56   :  { %557 = vmatpush.msra.mxu0 %v203_v33  ;;  %576 = vmatpush.msra.mxu1 %v220_v34  ;;  %v240_v21 = vld [vmem:[#allocation5 + $0x588] sm:$0xff]  ;;  %v270_v24 = vld [vmem:[#allocation5 + $0x678] sm:$0xff]  ;;  %v207_v26 = vld [vmem:[#allocation5 + $0x480] sm:$0xff] }
  0x57   :  { %597 = vmatpush.msra.mxu2 %v235_v36  ;;  %616 = vmatpush.msra.mxu3 %v252_v37  ;;  %v372_v23 = vld.sshfl [vmem:[#allocation1 + $0x10] sm:$0xff pattern:$0x73625140]  ;;  %v302_v25 = vld [vmem:[#allocation5 + $0x778] sm:$0xff]  ;;  %v239_v27 = vld [vmem:[#allocation5 + $0x580] sm:$0xff] }
  0x58   :  { %530 = vmatmul.f32.vlgmr.msrb.gmra.mxu2 %v360_v29  ;;  %558 = vmatpush.msra.mxu0 %v202_v38  ;;  %v371_v28 = vld.sshfl [vmem:[#allocation1 + $0x8] sm:$0xff pattern:$0x73625140]  ;;  %v373_v29 = vld.sshfl [vmem:[#allocation1 + $0x18] sm:$0xff pattern:$0x73625140] }
  0x59   :  { %577 = vmatpush.msra.mxu1 %v219_v39  ;;  %598 = vmatpush.msra.mxu2 %v234_v40  ;;  %v318_v33 = vld [vmem:[#allocation5 + $0x7f8] sm:$0xff]  ;;  %v268_v34 = vld [vmem:[#allocation5 + $0x668] sm:$0xff]  ;;  %v285_v35 = vld [vmem:[#allocation5 + $0x6f0] sm:$0xff] }
  0x5a   :  { %617 = vmatpush.msra.mxu3 %v251_v41  ;;  %490 = vmatmul.f32.vlgmr.msrb.gmra.mxu0 %v358_v30  ;;  %v269_v30 = vld [vmem:[#allocation5 + $0x670] sm:$0xff]  ;;  %v300_v36 = vld [vmem:[#allocation5 + $0x768] sm:$0xff]  ;;  %v267_v38 = vld [vmem:[#allocation5 + $0x660] sm:$0xff] }
  0x5b   :  { %550 = vmatmul.f32.vlgmr.msrb.gmra.mxu3 %v361_v31  ;;  %559 = vmatpush.msra.mxu0 %v201_v42  ;;  %v286_v31 = vld [vmem:[#allocation5 + $0x6f8] sm:$0xff]  ;;  %v317_v37 = vld [vmem:[#allocation5 + $0x7f0] sm:$0xff]  ;;  %v284_v39 = vld [vmem:[#allocation5 + $0x6e8] sm:$0xff] }
  0x5c   :  { %578 = vmatpush.msra.mxu1 %v218_v43  ;;  %599 = vmatpush.msra.mxu2 %v233_v44  ;;  %v299_v40 = vld [vmem:[#allocation5 + $0x760] sm:$0xff]  ;;  %v316_v41 = vld [vmem:[#allocation5 + $0x7e8] sm:$0xff]  ;;  %v266_v42 = vld [vmem:[#allocation5 + $0x658] sm:$0xff] }
  0x5d   :  { %618 = vmatpush.msra.mxu3 %v250_v45  ;;  %510 = vmatmul.f32.vlgmr.msrb.gmra.mxu1 %v359_v32  ;;  %v301_v32 = vld [vmem:[#allocation5 + $0x770] sm:$0xff]  ;;  %v283_v43 = vld [vmem:[#allocation5 + $0x6e0] sm:$0xff]  ;;  %v298_v44 = vld [vmem:[#allocation5 + $0x758] sm:$0xff] }
  0x5e   :  { %560 = vmatpush.msra.mxu0 %v200_v46  ;;  %579 = vmatpush.msra.mxu1 %v217_v47  ;;  %v315_v45 = vld [vmem:[#allocation5 + $0x7e0] sm:$0xff]  ;;  %v265_v46 = vld [vmem:[#allocation5 + $0x650] sm:$0xff]  ;;  %v282_v47 = vld [vmem:[#allocation5 + $0x6d8] sm:$0xff] }
  0x5f   :  { %600 = vmatpush.msra.mxu2 %v232_v48  ;;  %619 = vmatpush.msra.mxu3 %v249_v49  ;;  %v297_v48 = vld [vmem:[#allocation5 + $0x750] sm:$0xff]  ;;  %v314_v49 = vld [vmem:[#allocation5 + $0x7d8] sm:$0xff] }
  0x60   :  { %561 = vmatpush.msra.mxu0 %v199_v50  ;;  %580 = vmatpush.msra.mxu1 %v216_v51  ;;  %v264_v50 = vld [vmem:[#allocation5 + $0x648] sm:$0xff]  ;;  %v281_v51 = vld [vmem:[#allocation5 + $0x6d0] sm:$0xff] }
  0x61   :  { %601 = vmatpush.msra.mxu2 %v231_v52  ;;  %620 = vmatpush.msra.mxu3 %v248_v53  ;;  %v296_v52 = vld [vmem:[#allocation5 + $0x748] sm:$0xff]  ;;  %v313_v53 = vld [vmem:[#allocation5 + $0x7d0] sm:$0xff] }
  0x62   :  { %562 = vmatpush.msra.mxu0 %v198_v54  ;;  %581 = vmatpush.msra.mxu1 %v215_v55  ;;  %v263_v54 = vld [vmem:[#allocation5 + $0x640] sm:$0xff]  ;;  %v280_v55 = vld [vmem:[#allocation5 + $0x6c8] sm:$0xff] }
  0x63   :  { %602 = vmatpush.msra.mxu2 %v230_v56  ;;  %621 = vmatpush.msra.mxu3 %v247_v57  ;;  %v295_v56 = vld [vmem:[#allocation5 + $0x740] sm:$0xff]  ;;  %v312_v57 = vld [vmem:[#allocation5 + $0x7c8] sm:$0xff] }
  0x64   :  { %563 = vmatpush.msra.mxu0 %v197_v58  ;;  %582 = vmatpush.msra.mxu1 %v214_v59  ;;  %v262_v58 = vld [vmem:[#allocation5 + $0x638] sm:$0xff]  ;;  %v279_v59 = vld [vmem:[#allocation5 + $0x6c0] sm:$0xff] }
  0x65   :  { %603 = vmatpush.msra.mxu2 %v229_v60  ;;  %622 = vmatpush.msra.mxu3 %v246_v61  ;;  %v294_v60 = vld [vmem:[#allocation5 + $0x738] sm:$0xff]  ;;  %v311_v61 = vld [vmem:[#allocation5 + $0x7c0] sm:$0xff] }
  0x66   :  { %564 = vmatpush.msra.mxu0 %v196_v62  ;;  %583 = vmatpush.msra.mxu1 %v213_v63  ;;  %v261_v62 = vld [vmem:[#allocation5 + $0x630] sm:$0xff]  ;;  %v278_v63 = vld [vmem:[#allocation5 + $0x6b8] sm:$0xff] }
  0x67   :  { %604 = vmatpush.msra.mxu2 %v228_v0  ;;  %623 = vmatpush.msra.mxu3 %v245_v1  ;;  %v293_v0 = vld [vmem:[#allocation5 + $0x730] sm:$0xff]  ;;  %v310_v1 = vld [vmem:[#allocation5 + $0x7b8] sm:$0xff] }
  0x68   :  { %565 = vmatpush.msra.mxu0 %v195_v2  ;;  %584 = vmatpush.msra.mxu1 %v212_v3  ;;  %v260_v2 = vld [vmem:[#allocation5 + $0x628] sm:$0xff]  ;;  %v277_v3 = vld [vmem:[#allocation5 + $0x6b0] sm:$0xff] }
  0x69   :  { %605 = vmatpush.msra.mxu2 %v227_v4  ;;  %624 = vmatpush.msra.mxu3 %v244_v5  ;;  %v292_v4 = vld [vmem:[#allocation5 + $0x728] sm:$0xff]  ;;  %v309_v5 = vld [vmem:[#allocation5 + $0x7b0] sm:$0xff] }
  0x6a   :  { %566 = vmatpush.msra.mxu0 %v194_v6  ;;  %585 = vmatpush.msra.mxu1 %v211_v7  ;;  %v259_v6 = vld [vmem:[#allocation5 + $0x620] sm:$0xff]  ;;  %v276_v7 = vld [vmem:[#allocation5 + $0x6a8] sm:$0xff] }
  0x6b   :  { %606 = vmatpush.msra.mxu2 %v226_v8  ;;  %625 = vmatpush.msra.mxu3 %v243_v9  ;;  %v291_v8 = vld [vmem:[#allocation5 + $0x720] sm:$0xff]  ;;  %v308_v9 = vld [vmem:[#allocation5 + $0x7a8] sm:$0xff] }
  0x6c   :  { %567 = vmatpush.msra.mxu0 %v193_v10  ;;  %586 = vmatpush.msra.mxu1 %v210_v11  ;;  %v258_v10 = vld [vmem:[#allocation5 + $0x618] sm:$0xff]  ;;  %v275_v11 = vld [vmem:[#allocation5 + $0x6a0] sm:$0xff] }
  0x6d   :  { %607 = vmatpush.msra.mxu2 %v225_v12  ;;  %626 = vmatpush.msra.mxu3 %v242_v13  ;;  %v290_v12 = vld [vmem:[#allocation5 + $0x718] sm:$0xff]  ;;  %v307_v13 = vld [vmem:[#allocation5 + $0x7a0] sm:$0xff] }
  0x6e   :  { %568 = vmatpush.msra.mxu0 %v192_v14  ;;  %587 = vmatpush.msra.mxu1 %v209_v15  ;;  %v257_v14 = vld [vmem:[#allocation5 + $0x610] sm:$0xff]  ;;  %v274_v15 = vld [vmem:[#allocation5 + $0x698] sm:$0xff] }
  0x6f   :  { %608 = vmatpush.msra.mxu2 %v224_v16  ;;  %627 = vmatpush.msra.mxu3 %v241_v17  ;;  %v289_v16 = vld [vmem:[#allocation5 + $0x710] sm:$0xff]  ;;  %v306_v17 = vld [vmem:[#allocation5 + $0x798] sm:$0xff] }
  0x70   :  { %569 = vmatpush.msra.mxu0 %v191_v18  ;;  %588 = vmatpush.msra.mxu1 %v208_v19  ;;  %v256_v18 = vld [vmem:[#allocation5 + $0x608] sm:$0xff]  ;;  %v273_v19 = vld [vmem:[#allocation5 + $0x690] sm:$0xff] }
  0x71   :  { %609 = vmatpush.msra.mxu2 %v223_v20  ;;  %628 = vmatpush.msra.mxu3 %v240_v21  ;;  %v288_v20 = vld [vmem:[#allocation5 + $0x708] sm:$0xff]  ;;  %v305_v21 = vld [vmem:[#allocation5 + $0x790] sm:$0xff] }
  0x72   :  { %570 = vmatmul.f32.vlgmr.msra.gmra.mxu0 %v370_v22  ;;  %610 = vmatmul.f32.vlgmr.msra.gmra.mxu2 %v372_v23  ;;  %v255_v22 = vld [vmem:[#allocation5 + $0x600] sm:$0xff]  ;;  %v272_v23 = vld [vmem:[#allocation5 + $0x688] sm:$0xff] }
  0x73   :  { %634 = vmatpush.msrb.mxu0 %v270_v24  ;;  %674 = vmatpush.msrb.mxu2 %v302_v25  ;;  %v287_v24 = vld [vmem:[#allocation5 + $0x700] sm:$0xff]  ;;  %v304_v25 = vld [vmem:[#allocation5 + $0x788] sm:$0xff] }
  0x74   :  { %589 = vmatpush.msra.mxu1 %v207_v26  ;;  %629 = vmatpush.msra.mxu3 %v239_v27  ;;  %v374_v26 = vld.sshfl [vmem:[#allocation1 + $0x20] sm:$0xff pattern:$0x73625140]  ;;  %v376_v27 = vld.sshfl [vmem:[#allocation1 + $0x30] sm:$0xff pattern:$0x73625140] }
  0x75   :  { %590 = vmatmul.f32.vlgmr.msra.gmra.mxu1 %v371_v28  ;;  %630 = vmatmul.f32.vlgmr.msra.gmra.mxu3 %v373_v29  ;;  %v271_v28 = vld [vmem:[#allocation5 + $0x680] sm:$0xff] }
  0x76   :  { %635 = vmatpush.msrb.mxu0 %v269_v30  ;;  %654 = vmatpush.msrb.mxu1 %v286_v31  ;;  %v303_v29 = vld [vmem:[#allocation5 + $0x780] sm:$0xff]  ;;  %v377_v31 = vld.sshfl [vmem:[#allocation1 + $0x38] sm:$0xff pattern:$0x73625140] }
  0x77   :  { %675 = vmatpush.msrb.mxu2 %v301_v32  ;;  %694 = vmatpush.msrb.mxu3 %v318_v33  ;;  %v375_v30 = vld.sshfl [vmem:[#allocation1 + $0x28] sm:$0xff pattern:$0x73625140]  ;;  %v743_v32 = vld [vmem:[%s867_s2] ss:$0 sm:$0xff] }
  0x78   :  { %636 = vmatpush.msrb.mxu0 %v268_v34  ;;  %655 = vmatpush.msrb.mxu1 %v285_v35 }
  0x79   :  { %676 = vmatpush.msrb.mxu2 %v300_v36  ;;  %695 = vmatpush.msrb.mxu3 %v317_v37 }
  0x7a   :  { %637 = vmatpush.msrb.mxu0 %v267_v38  ;;  %656 = vmatpush.msrb.mxu1 %v284_v39 }
  0x7b   :  { %677 = vmatpush.msrb.mxu2 %v299_v40  ;;  %696 = vmatpush.msrb.mxu3 %v316_v41 }
  0x7c   :  { %638 = vmatpush.msrb.mxu0 %v266_v42  ;;  %657 = vmatpush.msrb.mxu1 %v283_v43 }
  0x7d   :  { %678 = vmatpush.msrb.mxu2 %v298_v44  ;;  %697 = vmatpush.msrb.mxu3 %v315_v45 }
  0x7e   :  { %639 = vmatpush.msrb.mxu0 %v265_v46  ;;  %658 = vmatpush.msrb.mxu1 %v282_v47 }
  0x7f   :  { %679 = vmatpush.msrb.mxu2 %v297_v48  ;;  %698 = vmatpush.msrb.mxu3 %v314_v49 }
  0x80   :  { %640 = vmatpush.msrb.mxu0 %v264_v50  ;;  %659 = vmatpush.msrb.mxu1 %v281_v51 }
  0x81   :  { %680 = vmatpush.msrb.mxu2 %v296_v52  ;;  %699 = vmatpush.msrb.mxu3 %v313_v53 }
  0x82   :  { %641 = vmatpush.msrb.mxu0 %v263_v54  ;;  %660 = vmatpush.msrb.mxu1 %v280_v55 }
  0x83   :  { %681 = vmatpush.msrb.mxu2 %v295_v56  ;;  %700 = vmatpush.msrb.mxu3 %v312_v57 }
  0x84   :  { %642 = vmatpush.msrb.mxu0 %v262_v58  ;;  %661 = vmatpush.msrb.mxu1 %v279_v59 }
  0x85   :  { %682 = vmatpush.msrb.mxu2 %v294_v60  ;;  %701 = vmatpush.msrb.mxu3 %v311_v61 }
  0x86   :  { %643 = vmatpush.msrb.mxu0 %v261_v62  ;;  %662 = vmatpush.msrb.mxu1 %v278_v63 }
  0x87   :  { %683 = vmatpush.msrb.mxu2 %v293_v0  ;;  %702 = vmatpush.msrb.mxu3 %v310_v1 }
  0x88   :  { %644 = vmatpush.msrb.mxu0 %v260_v2  ;;  %663 = vmatpush.msrb.mxu1 %v277_v3 }
  0x89   :  { %684 = vmatpush.msrb.mxu2 %v292_v4  ;;  %703 = vmatpush.msrb.mxu3 %v309_v5 }
  0x8a   :  { %645 = vmatpush.msrb.mxu0 %v259_v6  ;;  %664 = vmatpush.msrb.mxu1 %v276_v7 }
  0x8b   :  { %685 = vmatpush.msrb.mxu2 %v291_v8  ;;  %704 = vmatpush.msrb.mxu3 %v308_v9 }
  0x8c   :  { %646 = vmatpush.msrb.mxu0 %v258_v10  ;;  %665 = vmatpush.msrb.mxu1 %v275_v11 }
  0x8d   :  { %686 = vmatpush.msrb.mxu2 %v290_v12  ;;  %705 = vmatpush.msrb.mxu3 %v307_v13 }
  0x8e   :  { %647 = vmatpush.msrb.mxu0 %v257_v14  ;;  %666 = vmatpush.msrb.mxu1 %v274_v15 }
  0x8f   :  { %687 = vmatpush.msrb.mxu2 %v289_v16  ;;  %706 = vmatpush.msrb.mxu3 %v306_v17 }
  0x90   :  { %648 = vmatpush.msrb.mxu0 %v256_v18  ;;  %667 = vmatpush.msrb.mxu1 %v273_v19 }
  0x91   :  { %688 = vmatpush.msrb.mxu2 %v288_v20  ;;  %707 = vmatpush.msrb.mxu3 %v305_v21 }
  0x92   :  { %649 = vmatpush.msrb.mxu0 %v255_v22  ;;  %668 = vmatpush.msrb.mxu1 %v272_v23 }
  0x93   :  { %689 = vmatpush.msrb.mxu2 %v287_v24  ;;  %708 = vmatpush.msrb.mxu3 %v304_v25 }
  0x94   :  { %650 = vmatmul.f32.vlgmr.msrb.gmra.mxu0 %v374_v26  ;;  %690 = vmatmul.f32.vlgmr.msrb.gmra.mxu2 %v376_v27 }
  0x95   :  { %669 = vmatpush.msrb.mxu1 %v271_v28  ;;  %709 = vmatpush.msrb.mxu3 %v303_v29 }
  0x96   :  { %670 = vmatmul.f32.vlgmr.msrb.gmra.mxu1 %v375_v30  ;;  %710 = vmatmul.f32.vlgmr.msrb.gmra.mxu3 %v377_v31 }
  0xcb   :  { %v411_v33 = vpop.f32.mrf.mxu0 }
  0xcc   :  { %v412_v34 = vadd.f32 %v743_v32, %v411_v33 }
  0xce   :  { %v431_v35 = vpop.f32.mrf.mxu1 }
  0xcf   :  { %v432_v36 = vadd.f32 %v431_v35, %v412_v34 }
  0xd1   :  { %v451_v37 = vpop.f32.mrf.mxu2 }
  0xd2   :  { %v452_v38 = vadd.f32 %v451_v37, %v432_v36 }
  0xd4   :  { %v471_v39 = vpop.f32.mrf.mxu3 }
  0xd5   :  { %v472_v40 = vadd.f32 %v471_v39, %v452_v38 }
  0xd7   :  { %v491_v41 = vpop.f32.mrf.mxu0 }
  0xd8   :  { %v492_v42 = vadd.f32 %v491_v41, %v472_v40 }
  0xda   :  { %v511_v43 = vpop.f32.mrf.mxu1 }
  0xdb   :  { %v512_v44 = vadd.f32 %v511_v43, %v492_v42  ;;  %v531_v45 = vpop.f32.mrf.mxu2 }
  0xdd   :  { %v532_v46 = vadd.f32 %v531_v45, %v512_v44 }
  0xde   :  { %v551_v47 = vpop.f32.mrf.mxu3 }
  0xdf   :  { %v552_v49 = vadd.f32 %v551_v47, %v532_v46 }
  0xef   :  { %v571_v48 = vpop.f32.mrf.mxu0 }
  0xf0   :  { %v572_v50 = vadd.f32 %v571_v48, %v552_v49 }
  0xf2   :  { %v591_v51 = vpop.f32.mrf.mxu1 }
  0xf3   :  { %v592_v53 = vadd.f32 %v591_v51, %v572_v50 }
  0xf5   :  { %v611_v52 = vpop.f32.mrf.mxu2 }
  0xf6   :  { %v612_v54 = vadd.f32 %v611_v52, %v592_v53 }
  0xf8   :  { %v631_v55 = vpop.f32.mrf.mxu3 }
  0xf9   :  { %v632_v56 = vadd.f32 %v631_v55, %v612_v54 }
 0x111   :  { %v651_v57 = vpop.f32.mrf.mxu0 }
 0x112   :  { %v652_v58 = vadd.f32 %v651_v57, %v632_v56 }
 0x113   :  { %v671_v59 = vpop.f32.mrf.mxu1 }
 0x114   :  { %v672_v60 = vadd.f32 %v671_v59, %v652_v58 }
 0x117   :  { %v691_v61 = vpop.f32.mrf.mxu2 }
 0x118   :  { %v692_v62 = vadd.f32 %v691_v61, %v672_v60 }
 0x119   :  { %v711_v63 = vpop.f32.mrf.mxu3 }
 0x11a   :  { %v712_v0 = vadd.f32 %v711_v63, %v692_v62 }
 0x11c   :  { %714 = vst [vmem:[#allocation7] sm:$0xff] %v712_v0 }
 0x11d   :  { %718 = vsyncadd [#allocation4], 96  ;;  %s721_s27 = sshll.u32 %s868_s3, 4  ;;  %s828_s28 = smov [#allocation7]   ;;  %s722_s27 = int_to_ptr.hbm [resolvable:$true] %s721_s27 }
 0x11e   :  { %s719_s29 = sshll.u32 %s828_s28, 4  ;;  %s829_s30 = smov 2   ;;  %s720_s29 = int_to_ptr.vmem [resolvable:$true] %s719_s29 }
 0x11f   :  { %727 = dma.vmem_to_hbm [thread:$0]  %s720_s29, 32, %s722_s27, [#allocation4], %s824_s21, %s824_s21, %s829_s30  }
 0x120   :  { %820 = dma.done.wait [#allocation4], 128  }
 0x121   :  { %821 = vsyncadd [#allocation4], 4294967168 }
 0x122   :  { %732 = vsyncpa [#allocation3], 1 }
 0x123   :  { %733 = vsyncpa [#allocation6], 1 }
 0x124   :  { %734 = vsyncpa [#allocation4], 1 }

</bundles_post_ra>
